<compile_context>
chip_gen: v7x
topology: tpu7x:2x2x1
jax: 0.10.0
libtpu: 0.0.40
codegen_flags: <defaults>
</compile_context>

<pallas_src>
import copy
import functools
from typing import Any, Dict

import jax
import jax.numpy as jnp
from jax.experimental import pallas as pl
from jax.experimental.pallas import tpu as pltpu

_LANE = 128
_SUBLANE = 8
# ~2 MiB per tile: large enough to sit near the HBM roofline (measured copy
# kernels reach ~85% at >=512-wide/1 MiB tiles) while 2x(in)+2x(out) double
# buffers stay under 8 MiB -> fits v5e's 16 MiB scoped default and v7x's
# tighter 64 MiB physical VMEM without touching vmem_limit_bytes.
_TILE_BYTES_TARGET = 2 * 1024 * 1024


# ----------------------------------------------------------------------------
# Pallas kernel: the pass-through data path of the base model's forward().
# ----------------------------------------------------------------------------
def _passthrough_kernel(x_ref, o_ref):
    # Pure copy (vld + vst only) — all the base class ever does to the tensor.
    o_ref[...] = x_ref[...]


def _passthrough(x2d: jax.Array) -> jax.Array:
    """Identity over a (R, C) slab, tiled to the VMEM budget, output aliased
    to the input so the HBM round-trip can be elided."""
    R, C = x2d.shape
    itemsize = jnp.dtype(x2d.dtype).itemsize

    # ---- lane (last-axis) tile ---------------------------------------------
    # Full C is always legal; only split it when C is 128-aligned and an
    # 8-row full-C slab would already exceed the tile budget.
    if C % _LANE == 0 and C * _SUBLANE * itemsize > _TILE_BYTES_TARGET:
        tile_c = (_TILE_BYTES_TARGET // (_SUBLANE * itemsize)) // _LANE * _LANE
        tile_c = int(min(max(_LANE, tile_c), C))
    else:
        tile_c = C

    # ---- row (sublane-axis) tile -------------------------------------------
    rows_budget = max(_SUBLANE, _TILE_BYTES_TARGET // max(1, tile_c * itemsize))
    if rows_budget >= R:
        tile_r = R  # full extent: always legal, no masking
    else:
        tile_r = int(max(_SUBLANE, (rows_budget // _SUBLANE) * _SUBLANE))

    # cdiv grid: ragged edge blocks are masked by Pallas (no row truncation).
    grid = (pl.cdiv(R, tile_r), pl.cdiv(C, tile_c))

    # ---- compiler params -----------------------------------------------------
    # Both axes independent -> "parallel" so v7x's 2 TensorCores split the work
    # (harmless on single-TC v5e/v6e).  Only raise the scoped-VMEM limit when a
    # non-128-aligned full-C row forces an oversized tile.
    compiler_kwargs: Dict[str, Any] = {
        "dimension_semantics": ("parallel", "parallel"),
    }
    vmem_needed = 4 * tile_r * tile_c * itemsize  # 2 in + 2 out double buffers
    if vmem_needed > (12 << 20):
        compiler_kwargs["vmem_limit_bytes"] = int(
            min(vmem_needed + (8 << 20), 48 << 20)
        )

    return pl.pallas_call(
        _passthrough_kernel,
        out_shape=jax.ShapeDtypeStruct((R, C), x2d.dtype),
        grid=grid,
        in_specs=[pl.BlockSpec((tile_r, tile_c), lambda i, j: (i, j))],
        out_specs=pl.BlockSpec((tile_r, tile_c), lambda i, j: (i, j)),
        input_output_aliases={0: 0},  # output aliases input: copy elidable
        compiler_params=pltpu.CompilerParams(**compiler_kwargs),
    )(x2d)


@functools.partial(jax.jit, donate_argnums=(0,))
def _passthrough_donated(x2d: jax.Array) -> jax.Array:
    # Donating the (freshly reshaped) slab lets XLA honor the in/out alias and
    # drop the HBM read+write entirely for the identity path.
    return _passthrough(x2d)


# ----------------------------------------------------------------------------
# JAX-side re-implementation of TorchBaseModel.
# ----------------------------------------------------------------------------
class JaxBaseModel:
    """Pallas/JAX port of svtas TorchBaseModel (no parameters)."""

    def __init__(self, weight_init_cfg=None) -> None:
        self.weight_init_cfg = copy.deepcopy(weight_init_cfg)
        self._training = True
        self.pretrained = None

    # --- mode management (mirrors nn.Module.train / .eval) ------------------
    def train(self, val: bool = True):
        self._training = val
        return self

    def eval(self):
        return self.train(False)

    @property
    def training(self) -> bool:
        return self._training

    def _clear_memory_buffer(self):
        pass

    def init_weights(self, init_cfg: Dict = {}):
        # TODO(synk): torch.load of a pretrained checkpoint has no Pallas
        # equivalent; this port is synthetic and carries no weights.
        pass

    def __repr__(self):
        s = f"{self.__class__.__name__}()"
        if self.weight_init_cfg:
            s += f"\nweight_init_cfg={self.weight_init_cfg}"
        return s

    # --- abstract compute hooks ---------------------------------------------
    # TODO(synk): run_train/run_test are abstract (raise NotImplementedError)
    # in the torch base class; here they route the tensor through the Pallas
    # pass-through kernel so there is a concrete, runnable data path.
    def run_train(self, x: jnp.ndarray, **kwds: Any) -> Dict:
        return {"output": self._run_kernel(x)}

    def run_test(self, x: jnp.ndarray, **kwds: Any) -> Dict:
        return {"output": self._run_kernel(x)}

    def _run_kernel(self, x: jnp.ndarray) -> jnp.ndarray:
        n, c, h, w = x.shape  # NCHW, as in PyTorch
        hw = h * w
        # Lane-dense 2-D view: prefer a last axis that is a multiple of 128 so
        # every store is an unmasked full-lane vst; fold channels into the
        # lane axis when H*W alone is not 128-aligned.
        if hw % _LANE == 0:
            x2d = x.reshape(n * c, hw)
        elif (c * hw) % _LANE == 0:
            x2d = x.reshape(n, c * hw)
        else:
            x2d = x.reshape(n * c, hw)  # masked edge stores; still correct
        y2d = _passthrough_donated(x2d)
        return y2d.reshape(n, c, h, w)

    # --- forward dispatch (exact semantics of TorchBaseModel.forward) -------
    def forward(self, *args: Any, **kwds: Any) -> Dict:
        if self.training:
            return self.run_train(*args, **kwds)
        else:
            return self.run_test(*args, **kwds)

    __call__ = forward


if __name__ == "__main__":
    key = jax.random.PRNGKey(0)
    # Small NCHW input consistent with a video/image backbone feeding this base.
    x = jax.random.normal(key, (2, 4, 16, 16), dtype=jnp.float32)

    model = JaxBaseModel(weight_init_cfg={"type": "kaiming"})

    # training-mode dispatch -> run_train
    out_train = model(x)
    jax.block_until_ready(out_train["output"])

    # eval-mode dispatch -> run_test
    model.eval()
    out_test = model(x)
    jax.block_until_ready(out_test["output"])

    # The base model's data path is identity: verify exact reproduction.
    assert out_train["output"].shape == x.shape
    assert out_test["output"].dtype == x.dtype
    assert bool(jnp.array_equal(out_train["output"], x))
    assert bool(jnp.array_equal(out_test["output"], x))

    print("KERNEL_OK")
</pallas_src>

<mosaic_0001>
module attributes {stable_mosaic.version = 11 : i64} {
  func.func @_passthrough_kernel(%arg0: i32, %arg1: i32, %arg2: memref<8x256xf32, #tpu.memory_space<vmem>>, %arg3: memref<8x256xf32, #tpu.memory_space<vmem>>) attributes {dimension_semantics = [#tpu.dimension_semantics<parallel>, #tpu.dimension_semantics<parallel>], iteration_bounds = array<i64: 1, 1>, scalar_prefetch = 0 : i64, scratch_operands = 0 : i64, tpu.core_type = #tpu.core_type<tc>, window_params = [{transform_indices = @transform_0, window_bounds = array<i64: 8, 256>}, {transform_indices = @transform_1, window_bounds = array<i64: 8, 256>}]} {
    %c0 = arith.constant 0 : index
    %c0_0 = arith.constant 0 : index
    %0 = vector.load %arg2[%c0, %c0_0] : memref<8x256xf32, #tpu.memory_space<vmem>>, vector<8x256xf32>
    %c0_1 = arith.constant 0 : index
    %c0_2 = arith.constant 0 : index
    %1 = vector.load %arg3[%c0_1, %c0_2] : memref<8x256xf32, #tpu.memory_space<vmem>>, vector<8x256xf32>
    tpu.vector_store %arg3[%c0_1, %c0_2], %0 {strides = array<i32>} : memref<8x256xf32, #tpu.memory_space<vmem>>, vector<8x256xf32>,
    return
  }
  func.func @transform_0(%arg0: i32, %arg1: i32) -> (i32, i32) {
    %c0_i32 = arith.constant 0 : i32
    return %arg0, %arg1 : i32, i32
  }
  func.func @transform_1(%arg0: i32, %arg1: i32) -> (i32, i32) {
    %c0_i32 = arith.constant 0 : i32
    return %arg0, %arg1 : i32, i32
  }
}

</mosaic_0001>

<bundles_post_ra>
// kernel: _passthrough_donated.1
= control target key start
LH: loop header
LB: loop body
LE: loop exit
PB: predicated region body
PF: predicated region fallthrough
CT: control target
= control target key end

     0   :  { %6 = vsyncpa [#allocation3], 0  ;;  %s126_s0 = inlined_call_operand.hbm [shape: f32[8,256], index: 0, kind: input, shape index: {}, may-alias: {0,1}]   ;;  %s127_s1 = inlined_call_operand.hbm [shape: f32[8,256], index: 1, kind: output, shape index: {}, may-alias: {0,1}]  }
   0x1   :  { %7 = vsyncpa [#allocation4], 0  ;;  %s90_s6 = smov [#allocation2]   ;;  %s42_s10 = scalar_lea.hbm %s126_s0, 256 }
   0x2   :  { %s14_s7 = sshll.u32 %s90_s6, 4  ;;  %p43_p0 = scmp.ne.s32.totalorder %s126_s0, %s42_s10  ;;  %s15_s7 = int_to_ptr.vmem [resolvable:$true] %s14_s7 }
   0x3   :  { %p46_p1 = scmp.lt.u32.totalorder %s42_s10, %s126_s0 }
   0x5   :  { %p48_p2 = pnand %p46_p1, %p43_p0 }
   0x7   :  { %51 = shalt.err (!%p48_p2)
}
   0x8   :  { %s52_s15 = scalar_lea.vmem %s15_s7, 256  ;;  %p57_p4 = scmp.lt.s32.totalorder %s15_s7, %s15_s7 }
   0x9   :  { %p53_p3 = scmp.ne.s32.totalorder %s15_s7, %s52_s15  ;;  %p58_p5 = scmp.lt.s32.totalorder %s52_s15, %s52_s15 }
   0xb   :  { %p59_p6 = por %p58_p5, %p57_p4 }
   0xd   :  { %p60_p7 = pnand %p59_p6, %p53_p3 }
   0xf   :  { %63 = shalt.err (!%p60_p7)
}
  0x10   :  { %17 = dma.hbm_to_vmem [thread:$0]  %s126_s0, 256, %s15_s7, [#allocation3]  }
  0x11   :  { %86 = dma.done.wait [#allocation3], 256  }
  0x12   :  { %87 = vsyncadd [#allocation3], 4294967040  ;;  %s91_s18 = smov [#allocation5]   ;;  %v21_v0 = vld [vmem:[#allocation2] sm:$0xff]  ;;  %v22_v1 = vld [vmem:[#allocation2 + $0x8] sm:$0xff] }
  0x13   :  { %s31_s19 = sshll.u32 %s91_s18, 4  ;;  %23 = vst [vmem:[#allocation5] sm:$0xff] %v21_v0  ;;  %24 = vst [vmem:[#allocation5 + $0x8] sm:$0xff] %v22_v1  ;;  %s32_s19 = int_to_ptr.vmem [resolvable:$true] %s31_s19 }
  0x14   :  { %s64_s20 = scalar_lea.vmem %s32_s19, 256  ;;  %p69_p9 = scmp.lt.s32.totalorder %s32_s19, %s32_s19 }
  0x15   :  { %p65_p8 = scmp.ne.s32.totalorder %s32_s19, %s64_s20  ;;  %p70_p10 = scmp.lt.s32.totalorder %s64_s20, %s64_s20 }
  0x17   :  { %p71_p11 = por %p70_p10, %p69_p9 }
  0x19   :  { %p72_p12 = pnand %p71_p11, %p65_p8 }
  0x1b   :  { %75 = shalt.err (!%p72_p12)
}
  0x1c   :  { %s76_s0 = scalar_lea.hbm %s127_s1, 256 }
  0x1d   :  { %p77_p13 = scmp.ne.s32.totalorder %s127_s1, %s76_s0  ;;  %p80_p0 = scmp.lt.u32.totalorder %s76_s0, %s127_s1 }
  0x1f   :  { %p82_p1 = pnand %p80_p0, %p77_p13 }
  0x21   :  { %85 = shalt.err (!%p82_p1)
}
  0x22   :  { %34 = dma.vmem_to_hbm [thread:$0]  %s32_s19, 256, %s127_s1, [#allocation4]  }
  0x23   :  { %88 = dma.done.wait [#allocation4], 256  }
  0x24   :  { %89 = vsyncadd [#allocation4], 4294967040 }
  0x25   :  { %38 = vsyncpa [#allocation3], 1 }
  0x26   :  { %39 = vsyncpa [#allocation4], 1 }

</bundles_post_ra>
